<compile_context>
chip_gen: v7x
topology: tpu7x:2x2x1
jax: 0.10.0
libtpu: 0.0.40
codegen_flags: <defaults>
</compile_context>

<pallas_src>
import functools

import jax
import jax.numpy as jnp
from jax.experimental import pallas as pl
from jax.experimental.pallas import tpu as pltpu


def _round_up(v: int, m: int) -> int:
    return ((v + m - 1) // m) * m


def _stdnet_kernel(x_ref, w_ref, b_ref, o_ref, *, epsilon, beta, threshold,
                   matmul_dtype):
    # x tile arrives as f32; cast to the MXU-native dtype in-kernel (VPU cast
    # hides under the pipeline, avoids a separate wrapper pass over x).
    x = x_ref[...]
    if x.dtype != matmul_dtype:
        x = x.astype(matmul_dtype)

    # Linear layer on the MXU: (Bt, L) @ (L, A), f32 accumulation.
    cont = jnp.dot(x, w_ref[...], preferred_element_type=jnp.float32)

    # b_ref already holds bias + std_init (folded host-side).
    diag_chol = cont + b_ref[...]

    # Softplus(beta=10, threshold=2):
    #   softplus(x) = (1/beta) * log1p(exp(beta*x))  if beta*x <= threshold
    #               = x                              otherwise
    # exp/log1p run on the EUP slot; the dead branch is clamped with min() so
    # no inf/NaN is generated in-flight (also covers OOB ragged-block rows).
    z = beta * diag_chol
    soft = jnp.where(
        z > threshold,
        diag_chol,
        jnp.log1p(jnp.exp(jnp.minimum(z, threshold))) / beta,
    )

    o_ref[...] = (soft + jnp.float32(epsilon)).astype(o_ref.dtype)


def _reference(x, w_t, b, *, std_init, epsilon, beta=10.0, threshold=2.0):
    """Plain-JAX reference mirroring the PyTorch forward (f32)."""
    cont = x @ w_t + b
    diag_chol = cont + std_init
    z = beta * diag_chol
    soft = jnp.where(
        z > threshold,
        diag_chol,
        jnp.log1p(jnp.exp(jnp.minimum(z, threshold))) / beta,
    )
    return soft + epsilon


def stdnet_cont_diag(
    x,
    w_t,
    b,
    *,
    std_init,
    epsilon,
    beta=10.0,
    threshold=2.0,
    matmul_dtype=jnp.bfloat16,
    max_block_b=8192,
    min_pallas_batch=256,
):
    """Pallas forward for StdNet with Par_Strength.CONT_DIAG.

    x   : (B, latent_dim) float32
    w_t : (latent_dim, action_dim) float32   (transposed nn.Linear weight)
    b   : (1, action_dim) float32            (nn.Linear bias)
    matmul_dtype: MXU input dtype (bf16 default on all generations; f32
                  accumulation + f32 softplus epilogue either way).
    returns (B, action_dim) float32
    """
    B, L = x.shape
    A = w_t.shape[1]

    # --- one-time parameter prep (tiny, static) ------------------------------
    # Fold "+ ones(action_dim) * std_init" into the linear bias.
    b_eff = b.reshape(1, A).astype(jnp.float32) + jnp.float32(std_init)
    w_mm = w_t.astype(matmul_dtype)

    # Small-batch fast path: pallas_call fixed costs dwarf the actual work.
    if B < min_pallas_batch:
        return _reference(x.astype(jnp.float32), w_t.astype(jnp.float32),
                          b_eff, std_init=0.0, epsilon=epsilon,
                          beta=beta, threshold=threshold)

    # --- batch tiling ---------------------------------------------------------
    # x is DMA'd in f32 -> sublane pack of 8 rows.  Aim for >=2 grid steps so
    # v7x's two TensorCores both get work; cap the tile at max_block_b rows
    # (at 8192: ~1 MiB x-tile + 0.25 MiB out-tile, trivially within VMEM).
    sub = 8
    if B <= sub:
        Bt = B                                      # block == full dim (legal)
    else:
        Bt = _round_up(pl.cdiv(B, 2), sub)          # >=2 parallel steps
        Bt = max(sub, min(Bt, max_block_b))
    grid_b = pl.cdiv(B, Bt)                         # ragged last block is fine

    kernel = functools.partial(
        _stdnet_kernel,
        epsilon=float(epsilon),
        beta=float(beta),
        threshold=float(threshold),
        matmul_dtype=matmul_dtype,
    )

    out = pl.pallas_call(
        kernel,
        out_shape=jax.ShapeDtypeStruct((B, A), jnp.float32),
        grid_spec=pltpu.PrefetchScalarGridSpec(
            num_scalar_prefetch=0,
            grid=(grid_b,),
            in_specs=[
                # x: tiled along batch, stays f32 in HBM (cast in-kernel).
                pl.BlockSpec((Bt, L), lambda i: (i, 0)),
                # weights / bias: constant index_map -> DMA'd once, stay
                # VMEM-resident across all batch tiles.
                pl.BlockSpec((L, A), lambda i: (0, 0)),
                pl.BlockSpec((1, A), lambda i: (0, 0)),
            ],
            # Narrow (A-wide) output block: masked 8-lane stores, but HBM
            # writeback and the epilogue shrink 16x vs. lane-padding to 128.
            out_specs=pl.BlockSpec((Bt, A), lambda i: (i, 0)),
        ),
        compiler_params=pltpu.CompilerParams(
            dimension_semantics=("parallel",),
        ),
    )(x.astype(jnp.float32), w_mm, b_eff)

    return out


if __name__ == "__main__":
    # Module hyper-parameters (small, consistent with StdNet.__init__).
    batch = 2
    latent_dim = 32
    action_dim = 8
    std_init = 0.5
    epsilon = 1e-6

    key = jax.random.PRNGKey(0)
    kx, kw, kb, kx2 = jax.random.split(key, 4)

    # Deterministic parameter init (shapes from nn.Linear(latent_dim, action_dim)).
    bound = 1.0 / (latent_dim ** 0.5)
    w_t = jax.random.uniform(kw, (latent_dim, action_dim), jnp.float32, -bound, bound)
    b = jax.random.uniform(kb, (1, action_dim), jnp.float32, -bound, bound)

    # Small-shape check (batch=2): force the Pallas path, f32 MXU inputs for a
    # tight-tolerance comparison against the reference.
    x = jax.random.normal(kx, (batch, latent_dim), jnp.float32)
    out = stdnet_cont_diag(
        x, w_t, b,
        std_init=std_init, epsilon=epsilon,
        matmul_dtype=jnp.float32, min_pallas_batch=0,
    )
    out = jax.block_until_ready(out)
    ref = _reference(x, w_t, b, std_init=std_init, epsilon=epsilon)
    assert out.shape == (batch, action_dim)
    assert jnp.allclose(out, ref, atol=1e-5, rtol=1e-5)

    # Larger batched check: default bf16 MXU inputs, 2-step "parallel" grid
    # (megacore-shardable on v7x), ragged (non multiple-of-8) batch with no
    # wrapper-side padding.
    big_batch = 2047
    xb = jax.random.normal(kx2, (big_batch, latent_dim), jnp.float32)
    out_b = stdnet_cont_diag(
        xb, w_t, b,
        std_init=std_init, epsilon=epsilon,
        min_pallas_batch=0,
    )
    out_b = jax.block_until_ready(out_b)
    ref_b = _reference(xb, w_t, b, std_init=std_init, epsilon=epsilon)
    assert out_b.shape == (big_batch, action_dim)
    assert jnp.allclose(out_b, ref_b, atol=2e-2, rtol=2e-2)

    # Small-batch fast path (plain JAX below threshold) sanity check.
    out_fast = jax.block_until_ready(
        stdnet_cont_diag(x, w_t, b, std_init=std_init, epsilon=epsilon)
    )
    assert jnp.allclose(out_fast, ref, atol=1e-5, rtol=1e-5)

    # TODO(synk): other Par_Strength branches (SCALAR/DIAG/FULL/CONT_SCALAR/
    # CONT_HYBRID/CONT_FULL) are parameter reshaping / fill_triangular glue with
    # no matmul hot path; only CONT_DIAG (Linear + softplus) is in-kernel here.
    print("KERNEL_OK")
</pallas_src>

<mosaic_0001>
module attributes {stable_mosaic.version = 11 : i64} {
  func.func @_stdnet_kernel(%arg0: i32, %arg1: memref<2x32xf32, #tpu.memory_space<vmem>>, %arg2: memref<32x8xf32, #tpu.memory_space<vmem>>, %arg3: memref<1x8xf32, #tpu.memory_space<vmem>>, %arg4: memref<2x8xf32, #tpu.memory_space<vmem>>) attributes {dimension_semantics = [#tpu.dimension_semantics<parallel>], iteration_bounds = array<i64: 1>, scalar_prefetch = 0 : i64, scratch_operands = 0 : i64, tpu.core_type = #tpu.core_type<tc>, window_params = [{transform_indices = @transform_0, window_bounds = array<i64: 2, 32>}, {pipeline_mode = #tpu.pipeline_mode<synchronous>, transform_indices = @transform_1, window_bounds = array<i64: 32, 8>}, {pipeline_mode = #tpu.pipeline_mode<synchronous>, transform_indices = @transform_2, window_bounds = array<i64: 1, 8>}, {transform_indices = @transform_3, window_bounds = array<i64: 2, 8>}]} {
    %c0 = arith.constant 0 : index
    %c0_0 = arith.constant 0 : index
    %0 = vector.load %arg1[%c0, %c0_0] : memref<2x32xf32, #tpu.memory_space<vmem>>, vector<2x32xf32>
    %c0_1 = arith.constant 0 : index
    %c0_2 = arith.constant 0 : index
    %1 = vector.load %arg2[%c0_1, %c0_2] : memref<32x8xf32, #tpu.memory_space<vmem>>, vector<32x8xf32>
    %cst = arith.constant dense<0.000000e+00> : vector<2x8xf32>
    %2 = tpu.matmul %0, %1, %cst {dimension_numbers = #tpu.dot_dimension_numbers<[1], [0], [0], [1], [0, 0, 1, 1], [], []>} : vector<2x32xf32>, vector<32x8xf32>, vector<2x8xf32> -> vector<2x8xf32>
    %c0_3 = arith.constant 0 : index
    %c0_4 = arith.constant 0 : index
    %3 = vector.load %arg3[%c0_3, %c0_4] : memref<1x8xf32, #tpu.memory_space<vmem>>, vector<1x8xf32>
    %4 = vector.broadcast %3 : vector<1x8xf32> to vector<2x8xf32>
    %5 = arith.addf %2, %4 : vector<2x8xf32>
    %cst_5 = arith.constant 1.000000e+01 : f32
    %6 = vector.broadcast %cst_5 : f32 to vector<2x8xf32>
    %7 = arith.mulf %6, %5 : vector<2x8xf32>
    %cst_6 = arith.constant 2.000000e+00 : f32
    %8 = vector.broadcast %cst_6 : f32 to vector<2x8xf32>
    %9 = arith.cmpf ogt, %7, %8 : vector<2x8xf32>
    %cst_7 = arith.constant 2.000000e+00 : f32
    %10 = vector.broadcast %cst_7 : f32 to vector<2x8xf32>
    %11 = arith.minimumf %7, %10 : vector<2x8xf32>
    %12 = math.exp %11 : vector<2x8xf32>
    %13 = math.log1p %12 : vector<2x8xf32>
    %cst_8 = arith.constant 1.000000e+01 : f32
    %14 = vector.broadcast %cst_8 : f32 to vector<2x8xf32>
    %15 = arith.divf %13, %14 : vector<2x8xf32>
    %16 = arith.select %9, %5, %15 : vector<2x8xi1>, vector<2x8xf32>
    %cst_9 = arith.constant 9.99999997E-7 : f32
    %17 = vector.broadcast %cst_9 : f32 to vector<2x8xf32>
    %18 = arith.addf %16, %17 : vector<2x8xf32>
    %c0_10 = arith.constant 0 : index
    %c0_11 = arith.constant 0 : index
    %19 = vector.load %arg4[%c0_10, %c0_11] : memref<2x8xf32, #tpu.memory_space<vmem>>, vector<2x8xf32>
    tpu.vector_store %arg4[%c0_10, %c0_11], %18 {strides = array<i32>} : memref<2x8xf32, #tpu.memory_space<vmem>>, vector<2x8xf32>,
    return
  }
  func.func @transform_0(%arg0: i32) -> (i32, i32) {
    %c0_i32 = arith.constant 0 : i32
    %c0_i32_0 = arith.constant 0 : i32
    return %arg0, %c0_i32 : i32, i32
  }
  func.func @transform_1(%arg0: i32) -> (i32, i32) {
    %c0_i32 = arith.constant 0 : i32
    %c0_i32_0 = arith.constant 0 : i32
    %c0_i32_1 = arith.constant 0 : i32
    return %c0_i32, %c0_i32_0 : i32, i32
  }
  func.func @transform_2(%arg0: i32) -> (i32, i32) {
    %c0_i32 = arith.constant 0 : i32
    %c0_i32_0 = arith.constant 0 : i32
    %c0_i32_1 = arith.constant 0 : i32
    return %c0_i32, %c0_i32_0 : i32, i32
  }
  func.func @transform_3(%arg0: i32) -> (i32, i32) {
    %c0_i32 = arith.constant 0 : i32
    %c0_i32_0 = arith.constant 0 : i32
    return %arg0, %c0_i32 : i32, i32
  }
}

</mosaic_0001>

<bundles_post_ra>
// kernel: tpu_custom_call.1
= control target key start
LH: loop header
LB: loop body
LE: loop exit
PB: predicated region body
PF: predicated region fallthrough
CT: control target
= control target key end

     0   :  { %v191_v3 = vmov 0.0|0.0   ;;  %vm192_vm0 = vmmov 0   ;;  %v193_v6 = vmov 0.0   ;;  %s245_s0 = inlined_call_operand.vmem [shape: f32[2,32], index: 0, kind: input, shape index: {}]   ;;  %s246_s1 = inlined_call_operand.vmem [shape: f32[32,8], index: 1, kind: input, shape index: {}]   ;;  %s247_s2 = inlined_call_operand.vmem [shape: f32[1,8], index: 2, kind: input, shape index: {}]   ;;  %s248_s3 = inlined_call_operand.hbm [shape: f32[2,8], index: 3, kind: output, shape index: {}]  }
   0x1   :  { %v16_v0 = vld [vmem:[%s246_s1] sm:$0xff]  ;;  %v17_v1 = vld [vmem:[%s246_s1 + $0x8] sm:$0xff]  ;;  %v18_v2 = vld [vmem:[%s246_s1 + $0x10] sm:$0xff]  ;;  %153 = vmatprep.subr.bf16.mxu0 %v191_v3  ;;  %150 = vmatprep.mubr.msk.f32.mxu0 %vm192_vm0, %v193_v6 }
   0x2   :  { %v154_v4 = vpack.c.bf16 %v17_v1, %v16_v0  ;;  %v19_v5 = vld [vmem:[%s246_s1 + $0x18] sm:$0xff] }
   0x3   :  { %8 = vsyncpa [#allocation3], 0  ;;  %v157_v7 = vpack.c.bf16 %v19_v5, %v18_v2  ;;  %v15_v8 = vld [vmem:[%s245_s0] sm:$0x3]  ;;  %vm27_vm1 = vcmask 261120   ;;  %s194_s0 = smov [#allocation2]  }
   0x4   :  { %155 = vmatpush3.bf16.msra.mxu0 %v154_v4  ;;  %v135_v9 = vld [vmem:[%s247_s2] ss:$0 sm:$0xff]  ;;  %s127_s1 = sshll.u32 %s194_s0, 4  ;;  %vm119_vm4 = vcmask 58368   ;;  %s128_s1 = int_to_ptr.vmem [resolvable:$true] %s127_s1 }
   0x5   :  { %156 = vmatprep.subr.bf16.mxu0 %v191_v3  ;;  %s167_s2 = scalar_lea.vmem %s128_s1, 32  ;;  %p172_p1 = scmp.lt.s32.totalorder %s128_s1, %s128_s1 }
   0x6   :  { %p168_p0 = scmp.ne.s32.totalorder %s128_s1, %s167_s2  ;;  %p173_p2 = scmp.lt.s32.totalorder %s167_s2, %s167_s2 }
   0x8   :  { %158 = vmatpush3.bf16.msra.mxu0 %v157_v7  ;;  %p174_p3 = por %p173_p2, %p172_p1 }
   0xa   :  { %p175_p4 = pnand %p174_p3, %p168_p0 }
   0xb   :  { %151 = vmatmul.mubr.msk.f32.vlgmr.msra.gmra.mrb[0].mxu0 %vm27_vm1, %v15_v8 }
  0xde   :  { %v97_v10 = vpop.f32.mrb[0].mxu0 }
  0xdf   :  { %v98_v11 = vadd.f32 %v135_v9, %v97_v10  ;;  %v152_v12 = vpop.f32.mrb[1].mxu0 }
  0xe1   :  { %v101_v13 = vmul.f32 10.0, %v98_v11 }
  0xe3   :  { %v103_v14 = vmin.f32 %v101_v13, 2.0  ;;  %vm102_vm3 = vcmp.gt.f32.partialorder %v101_v13, 2.0 }
  0xe5   :  { %v104_v15 = vmul.f32 1.442695, %v103_v14 }
  0xe7   :  { %163 = vpow2.f32 %v104_v15 }
  0xf1   :  { %v164_v16 = vpop.eup %163 }
  0xf2   :  { %v106_v17 = vadd.f32 1.0, %v164_v16  ;;  %v109_v18 = vmul.f32 -0.5, %v164_v16  ;;  %v112_v20 = vand.u32 2147483647, %v164_v16 }
  0xf4   :  { %165 = vlog2.f32 %v106_v17  ;;  %v110_v19 = vadd.f32 1.0, %v109_v18  ;;  %vm113_vm2 = vcmp.lt.f32.partialorder %v112_v20, 0.0004427343 }
  0xf6   :  { %v111_v23 = vmul.f32 %v164_v16, %v110_v19 }
  0xfe   :  { %v166_v21 = vpop.eup %165 }
  0xff   :  { %v108_v22 = vmul.f32 0.6931472, %v166_v21 }
 0x101   :  { %v114_v24 = vsel %vm113_vm2, %v111_v23, %v108_v22 }
 0x102   :  { %v116_v25 = vmul.f32 0.1, %v114_v24 }
 0x104   :  { %v117_v26 = vsel %vm102_vm3, %v98_v11, %v116_v25 }
 0x105   :  { %v118_v27 = vadd.f32 1e-06, %v117_v26 }
 0x107   :  { %120 = vst.msk [vmem:[#allocation2] sm:$0x3] %vm119_vm4, %v118_v27 }
 0x108   :  { %178 = shalt.err (!%p175_p4)
}
 0x109   :  { %s179_s26 = scalar_lea.hbm %s248_s3, 32 }
 0x10a   :  { %p180_p5 = scmp.ne.s32.totalorder %s248_s3, %s179_s26  ;;  %p183_p6 = scmp.lt.u32.totalorder %s179_s26, %s248_s3 }
 0x10c   :  { %p185_p7 = pnand %p183_p6, %p180_p5 }
 0x10e   :  { %188 = shalt.err (!%p185_p7)
}
 0x10f   :  { %130 = dma.vmem_to_hbm [thread:$0]  %s128_s1, 32, %s248_s3, [#allocation3]  }
 0x110   :  { %189 = dma.done.wait [#allocation3], 32  }
 0x111   :  { %190 = vsyncadd [#allocation3], 4294967264 }
 0x112   :  { %134 = vsyncpa [#allocation3], 1 }

</bundles_post_ra>
